<compile_context>
chip_gen: v6e
topology: v6e:2x2x1
jax: 0.10.0
libtpu: 0.0.40
codegen_flags: <defaults>
</compile_context>

<pallas_src>
import jax
import jax.numpy as jnp
from jax.experimental import pallas as pl
from jax.experimental.pallas import tpu as pltpu


def _round_up(a: int, b: int) -> int:
    return (a + b - 1) // b * b


def _device_kind() -> str:
    try:
        return jax.devices()[0].device_kind.lower()
    except Exception:  # pragma: no cover - defensive
        return ""


def _activation_dtype():
    """bf16 activations on v6e/v7x (bf16 EUP/VPU); f32 on v5e and older."""
    kind = _device_kind()
    if any(tag in kind for tag in ("v2", "v3", "v4", "v5")):
        return jnp.float32
    return jnp.bfloat16


# ----------------------------------------------------------------------------- kernel


def _make_lstm_classifier_kernel(num_layers: int, h_pad: int, act_dtype):
    """refs = (x, [w_igo_l, b_igo_l] * L, fc_w_T, fc_b, out)."""

    def kernel(*refs):
        x_ref = refs[0]
        fcw_ref = refs[-3]
        fcb_ref = refs[-2]
        out_ref = refs[-1]

        # bf16 operands feed the MXU at native rate; accumulation stays f32.
        h = x_ref[...].astype(jnp.bfloat16)  # (TILE_B, in_dim)

        for l in range(num_layers):
            w_ref = refs[1 + 2 * l]  # (in_pad, 3*H_pad) bf16, gates i|g|o fused
            b_ref = refs[2 + 2 * l]  # (1, 3*H_pad)      f32, zero in padded lanes

            # Single fused MXU matmul per layer; static 128-aligned gate slices.
            g = jnp.dot(h, w_ref[...], preferred_element_type=jnp.float32) + b_ref[...]
            g = g.astype(act_dtype)
            g_i = g[:, 0 * h_pad:1 * h_pad]
            g_g = g[:, 1 * h_pad:2 * h_pad]
            g_o = g[:, 2 * h_pad:3 * h_pad]

            # Zero state: c_prev == 0 -> forget gate inert, c = sigmoid(i)*tanh(g).
            # Padded lanes stay exactly 0: sigmoid(0)*tanh(0) == 0.
            c = jax.nn.sigmoid(g_i) * jnp.tanh(g_g)
            h = (jax.nn.sigmoid(g_o) * jnp.tanh(c)).astype(jnp.bfloat16)

        # Final Linear into a lane-padded (TILE_B, OUT_PAD) slab (unmasked stores).
        out_ref[...] = (
            jnp.dot(h, fcw_ref[...], preferred_element_type=jnp.float32)
            + fcb_ref[...]
        )

    return kernel


# ------------------------------------------------------------------- param packing


def pack_params(params, *, num_layers, hidden_dim, output_size):
    """One-time conversion of PyTorch-layout params into kernel operands.

    - drops W_hh entirely (zero h_prev) and the forget-gate rows of W_ih (zero c_prev)
    - fuses the i/g/o gate weights into one pre-transposed bf16 (in_pad, 3*H_pad) array
      (H zero-padded to a 128-lane multiple) and fuses/pads b_ih + b_hh accordingly
    - pads the fc weight/bias to (H_pad, out_pad) with zero rows/columns
    """
    H = hidden_dim
    H_pad = _round_up(H, 128)
    out_pad = _round_up(output_size, 128)

    packed = []
    for l in range(num_layers):
        w_ih = jnp.asarray(params[f"w_ih_{l}"], jnp.float32)          # (4H, in_l)
        in_l = w_ih.shape[1]
        in_pad = in_l if l == 0 else H_pad                            # layer>0 reads padded h
        bias = (jnp.asarray(params[f"b_ih_{l}"], jnp.float32)
                + jnp.asarray(params[f"b_hh_{l}"], jnp.float32))      # (4H,)

        w_fused = jnp.zeros((in_pad, 3 * H_pad), jnp.float32)
        b_fused = jnp.zeros((1, 3 * H_pad), jnp.float32)
        for slot, gate in enumerate((0, 2, 3)):                       # i, g, o (drop f)
            w_gate = jnp.transpose(w_ih[gate * H:(gate + 1) * H])     # (in_l, H)
            w_fused = w_fused.at[:in_l, slot * H_pad:slot * H_pad + H].set(w_gate)
            b_fused = b_fused.at[0, slot * H_pad:slot * H_pad + H].set(
                bias[gate * H:(gate + 1) * H])
        packed.append(w_fused.astype(jnp.bfloat16))
        packed.append(b_fused)                                        # stays f32

    fc_w = jnp.zeros((H_pad, out_pad), jnp.float32)
    fc_w = fc_w.at[:H, :output_size].set(
        jnp.transpose(jnp.asarray(params["fc_w"], jnp.float32)))
    fc_b = jnp.zeros((1, out_pad), jnp.float32)
    fc_b = fc_b.at[0, :output_size].set(jnp.asarray(params["fc_b"], jnp.float32))
    packed.append(fc_w.astype(jnp.bfloat16))
    packed.append(fc_b)
    return packed


# ----------------------------------------------------------------------------- wrapper


def lstm_classifier_forward(x, packed_params, *, num_layers, hidden_dim,
                            output_size, tile_b=256):
    """x: (batch, input_dim) f32. packed_params: output of pack_params (built once)."""
    batch, input_dim = x.shape
    H_pad = _round_up(hidden_dim, 128)
    out_pad = _round_up(output_size, 128)
    act_dtype = _activation_dtype()

    # Batch tiling: multiples of 16 rows (bf16 sublane packing); force >= 2 grid
    # steps so both v7x TensorCores get work and x/out DMA pipelines against MXU.
    batch16 = _round_up(batch, 16)
    tile_cap = max(16, _round_up(tile_b, 16))
    n_steps = max(2, pl.cdiv(batch16, tile_cap))
    tile = min(tile_cap, _round_up(pl.cdiv(batch16, n_steps), 16))
    batch_pad = tile * n_steps
    x_p = jnp.pad(x, ((0, batch_pad - batch), (0, 0)))

    # Explicit scoped-VMEM budget: params (assume double-buffered worst case) +
    # double-buffered I/O blocks + gate intermediates + headroom; capped below
    # physical VMEM (64 MiB on v7x, 128 MiB on v5e/v6e).
    param_bytes = sum(int(a.size) * a.dtype.itemsize for a in packed_params) * 2
    io_bytes = 2 * (tile * input_dim * 4 + tile * out_pad * 4)
    interm_bytes = 4 * tile * 3 * H_pad * 4
    vmem_limit = param_bytes + io_bytes + interm_bytes + (4 << 20)
    vmem_cap = (60 << 20) if "v7" in _device_kind() else (110 << 20)
    vmem_limit = int(min(max(vmem_limit, 32 << 20), vmem_cap))

    kernel = _make_lstm_classifier_kernel(num_layers, H_pad, act_dtype)

    def _call(weight_pipeline_mode):
        in_specs = [pl.BlockSpec((tile, input_dim), lambda b: (b, 0))]
        # Weights/biases: full-block, constant index_map -> fetched once, resident.
        for arr in packed_params:
            if weight_pipeline_mode is None:
                in_specs.append(pl.BlockSpec(arr.shape, lambda b: (0, 0)))
            else:
                in_specs.append(pl.BlockSpec(arr.shape, lambda b: (0, 0),
                                             pipeline_mode=weight_pipeline_mode))
        out_spec = pl.BlockSpec((tile, out_pad), lambda b: (b, 0))
        return pl.pallas_call(
            kernel,
            out_shape=jax.ShapeDtypeStruct((batch_pad, out_pad), jnp.float32),
            grid=(batch_pad // tile,),
            in_specs=in_specs,
            out_specs=out_spec,
            compiler_params=pltpu.CompilerParams(
                dimension_semantics=("parallel",),
                vmem_limit_bytes=vmem_limit,
            ),
        )(x_p, *packed_params)

    try:
        # Single-buffer the constant weight blocks (halves their VMEM footprint).
        out = _call(pl.Buffered(1))
    except Exception:
        # Fallback: default double-buffering if Buffered(1) is unsupported here.
        out = _call(None)

    return out[:batch, :output_size]


# --------------------------------------------------------------------------- reference


def _reference_forward_f32(x, params, *, num_layers, hidden_dim):
    """Pure-JAX f32 reference matching PyTorch nn.LSTM (seq_len=1, zero state) + Linear."""
    h = x
    H = hidden_dim
    for l in range(num_layers):
        w_ih = params[f"w_ih_{l}"]
        b = params[f"b_ih_{l}"] + params[f"b_hh_{l}"]
        gates = h @ w_ih.T + b
        i_g = jax.nn.sigmoid(gates[:, 0:H])
        g_g = jnp.tanh(gates[:, 2 * H:3 * H])
        o_g = jax.nn.sigmoid(gates[:, 3 * H:4 * H])
        c = i_g * g_g
        h = o_g * jnp.tanh(c)
    return h @ params["fc_w"].T + params["fc_b"]


def _reference_forward_packed(x, packed, *, num_layers, hidden_dim, output_size,
                              act_dtype):
    """Pure-JAX reference mirroring the kernel's packed bf16/act-dtype numerics."""
    H_pad = _round_up(hidden_dim, 128)
    h = x.astype(jnp.bfloat16)
    for l in range(num_layers):
        w = packed[2 * l]
        b = packed[2 * l + 1]
        g = (jnp.dot(h, w, preferred_element_type=jnp.float32) + b).astype(act_dtype)
        g_i = g[:, 0 * H_pad:1 * H_pad]
        g_g = g[:, 1 * H_pad:2 * H_pad]
        g_o = g[:, 2 * H_pad:3 * H_pad]
        c = jax.nn.sigmoid(g_i) * jnp.tanh(g_g)
        h = (jax.nn.sigmoid(g_o) * jnp.tanh(c)).astype(jnp.bfloat16)
    out = jnp.dot(h, packed[-2], preferred_element_type=jnp.float32) + packed[-1]
    return out[:, :output_size]


# ------------------------------------------------------------------------------- init


def init_params(key, input_dim, hidden_dim, num_layers, output_size):
    """Deterministic uniform(-1/sqrt(H), 1/sqrt(H)) init, like PyTorch defaults."""
    params = {}
    k = 1.0 / jnp.sqrt(jnp.float32(hidden_dim))
    for l in range(num_layers):
        in_l = input_dim if l == 0 else hidden_dim
        key, k1, k2, k3, k4 = jax.random.split(key, 5)
        params[f"w_ih_{l}"] = jax.random.uniform(k1, (4 * hidden_dim, in_l),
                                                 jnp.float32, -k, k)
        params[f"w_hh_{l}"] = jax.random.uniform(k2, (4 * hidden_dim, hidden_dim),
                                                 jnp.float32, -k, k)
        params[f"b_ih_{l}"] = jax.random.uniform(k3, (4 * hidden_dim,),
                                                 jnp.float32, -k, k)
        params[f"b_hh_{l}"] = jax.random.uniform(k4, (4 * hidden_dim,),
                                                 jnp.float32, -k, k)
    key, k1, k2 = jax.random.split(key, 3)
    params["fc_w"] = jax.random.uniform(k1, (output_size, hidden_dim),
                                        jnp.float32, -k, k)
    params["fc_b"] = jax.random.uniform(k2, (output_size,),
                                        jnp.float32, -k, k)
    return params


if __name__ == "__main__":
    # Small shapes: batch=2, input_dim=16, hidden_dim=32, num_layers=2, output=8
    batch, input_dim, hidden_dim, num_layers, output_size = 2, 16, 32, 2, 8

    key = jax.random.PRNGKey(0)
    key, xk = jax.random.split(key)
    x = jax.random.normal(xk, (batch, input_dim), jnp.float32)
    params = init_params(key, input_dim, hidden_dim, num_layers, output_size)

    # Pack (fuse / transpose / prune / pad / bf16-cast) ONCE, outside the call path.
    packed = pack_params(params, num_layers=num_layers, hidden_dim=hidden_dim,
                         output_size=output_size)

    out = jax.block_until_ready(
        lstm_classifier_forward(x, packed, num_layers=num_layers,
                                hidden_dim=hidden_dim, output_size=output_size))
    assert out.shape == (batch, output_size)

    # Check vs. a reference with identical packed bf16-weight numerics.
    ref_packed = _reference_forward_packed(
        x, packed, num_layers=num_layers, hidden_dim=hidden_dim,
        output_size=output_size, act_dtype=_activation_dtype())
    assert jnp.allclose(out, ref_packed, atol=3e-2, rtol=3e-2), \
        "mismatch vs packed bf16 reference"

    # Loose sanity check vs. the full-f32 PyTorch-equivalent reference.
    ref_f32 = _reference_forward_f32(x, params, num_layers=num_layers,
                                     hidden_dim=hidden_dim)
    assert jnp.allclose(out, ref_f32, atol=7e-2, rtol=7e-2), \
        "mismatch vs f32 reference"

    print("KERNEL_OK")
</pallas_src>

<mosaic_0001>
module attributes {stable_mosaic.version = 11 : i64} {
  func.func @kernel(%arg0: i32, %arg1: memref<16x16xf32, #tpu.memory_space<vmem>>, %arg2: memref<16x384xbf16, #tpu.memory_space<vmem>>, %arg3: memref<1x384xf32, #tpu.memory_space<vmem>>, %arg4: memref<128x384xbf16, #tpu.memory_space<vmem>>, %arg5: memref<1x384xf32, #tpu.memory_space<vmem>>, %arg6: memref<128x128xbf16, #tpu.memory_space<vmem>>, %arg7: memref<1x128xf32, #tpu.memory_space<vmem>>, %arg8: memref<16x128xf32, #tpu.memory_space<vmem>>) attributes {dimension_semantics = [#tpu.dimension_semantics<parallel>], iteration_bounds = array<i64: 2>, scalar_prefetch = 0 : i64, scratch_operands = 0 : i64, tpu.core_type = #tpu.core_type<tc>, window_params = [{transform_indices = @transform_0, window_bounds = array<i64: 16, 16>}, {pipeline_mode = #tpu.pipeline_mode<synchronous>, transform_indices = @transform_1, window_bounds = array<i64: 16, 384>}, {pipeline_mode = #tpu.pipeline_mode<synchronous>, transform_indices = @transform_2, window_bounds = array<i64: 1, 384>}, {pipeline_mode = #tpu.pipeline_mode<synchronous>, transform_indices = @transform_3, window_bounds = array<i64: 128, 384>}, {pipeline_mode = #tpu.pipeline_mode<synchronous>, transform_indices = @transform_4, window_bounds = array<i64: 1, 384>}, {pipeline_mode = #tpu.pipeline_mode<synchronous>, transform_indices = @transform_5, window_bounds = array<i64: 128, 128>}, {pipeline_mode = #tpu.pipeline_mode<synchronous>, transform_indices = @transform_6, window_bounds = array<i64: 1, 128>}, {transform_indices = @transform_7, window_bounds = array<i64: 16, 128>}]} {
    %c0 = arith.constant 0 : index
    %c0_0 = arith.constant 0 : index
    %0 = vector.load %arg1[%c0, %c0_0] : memref<16x16xf32, #tpu.memory_space<vmem>>, vector<16x16xf32>
    %1 = arith.truncf %0 : vector<16x16xf32> to vector<16x16xbf16>
    %c0_1 = arith.constant 0 : index
    %c0_2 = arith.constant 0 : index
    %2 = vector.load %arg2[%c0_1, %c0_2] : memref<16x384xbf16, #tpu.memory_space<vmem>>, vector<16x384xbf16>
    %cst = arith.constant dense<0.000000e+00> : vector<16x384xf32>
    %3 = tpu.matmul %1, %2, %cst {dimension_numbers = #tpu.dot_dimension_numbers<[1], [0], [0], [1], [0, 0, 1, 1], [], []>} : vector<16x16xbf16>, vector<16x384xbf16>, vector<16x384xf32> -> vector<16x384xf32>
    %c0_3 = arith.constant 0 : index
    %c0_4 = arith.constant 0 : index
    %4 = vector.load %arg3[%c0_3, %c0_4] : memref<1x384xf32, #tpu.memory_space<vmem>>, vector<1x384xf32>
    %5 = vector.broadcast %4 : vector<1x384xf32> to vector<16x384xf32>
    %6 = arith.addf %3, %5 : vector<16x384xf32>
    %7 = arith.truncf %6 : vector<16x384xf32> to vector<16x384xbf16>
    %8 = vector.extract_strided_slice %7 {offsets = [0, 0], sizes = [16, 128], strides = [1, 1]} : vector<16x384xbf16> to vector<16x128xbf16>
    %9 = vector.extract_strided_slice %7 {offsets = [0, 128], sizes = [16, 128], strides = [1, 1]} : vector<16x384xbf16> to vector<16x128xbf16>
    %10 = vector.extract_strided_slice %7 {offsets = [0, 256], sizes = [16, 128], strides = [1, 1]} : vector<16x384xbf16> to vector<16x128xbf16>
    %11 = arith.negf %8 : vector<16x128xbf16>
    %12 = math.exp %11 : vector<16x128xbf16>
    %cst_5 = arith.constant 1.000000e+00 : bf16
    %13 = vector.broadcast %cst_5 : bf16 to vector<16x128xbf16>
    %14 = arith.addf %13, %12 : vector<16x128xbf16>
    %15 = arith.divf %13, %14 : vector<16x128xbf16>
    %16 = math.tanh %9 : vector<16x128xbf16>
    %17 = arith.mulf %15, %16 : vector<16x128xbf16>
    %18 = arith.negf %10 : vector<16x128xbf16>
    %19 = math.exp %18 : vector<16x128xbf16>
    %cst_6 = arith.constant 1.000000e+00 : bf16
    %20 = vector.broadcast %cst_6 : bf16 to vector<16x128xbf16>
    %21 = arith.addf %20, %19 : vector<16x128xbf16>
    %22 = arith.divf %20, %21 : vector<16x128xbf16>
    %23 = math.tanh %17 : vector<16x128xbf16>
    %24 = arith.mulf %22, %23 : vector<16x128xbf16>
    %c0_7 = arith.constant 0 : index
    %c0_8 = arith.constant 0 : index
    %25 = vector.load %arg4[%c0_7, %c0_8] : memref<128x384xbf16, #tpu.memory_space<vmem>>, vector<128x384xbf16>
    %cst_9 = arith.constant dense<0.000000e+00> : vector<16x384xf32>
    %26 = tpu.matmul %24, %25, %cst_9 {dimension_numbers = #tpu.dot_dimension_numbers<[1], [0], [0], [1], [0, 0, 1, 1], [], []>} : vector<16x128xbf16>, vector<128x384xbf16>, vector<16x384xf32> -> vector<16x384xf32>
    %c0_10 = arith.constant 0 : index
    %c0_11 = arith.constant 0 : index
    %27 = vector.load %arg5[%c0_10, %c0_11] : memref<1x384xf32, #tpu.memory_space<vmem>>, vector<1x384xf32>
    %28 = vector.broadcast %27 : vector<1x384xf32> to vector<16x384xf32>
    %29 = arith.addf %26, %28 : vector<16x384xf32>
    %30 = arith.truncf %29 : vector<16x384xf32> to vector<16x384xbf16>
    %31 = vector.extract_strided_slice %30 {offsets = [0, 0], sizes = [16, 128], strides = [1, 1]} : vector<16x384xbf16> to vector<16x128xbf16>
    %32 = vector.extract_strided_slice %30 {offsets = [0, 128], sizes = [16, 128], strides = [1, 1]} : vector<16x384xbf16> to vector<16x128xbf16>
    %33 = vector.extract_strided_slice %30 {offsets = [0, 256], sizes = [16, 128], strides = [1, 1]} : vector<16x384xbf16> to vector<16x128xbf16>
    %34 = arith.negf %31 : vector<16x128xbf16>
    %35 = math.exp %34 : vector<16x128xbf16>
    %cst_12 = arith.constant 1.000000e+00 : bf16
    %36 = vector.broadcast %cst_12 : bf16 to vector<16x128xbf16>
    %37 = arith.addf %36, %35 : vector<16x128xbf16>
    %38 = arith.divf %36, %37 : vector<16x128xbf16>
    %39 = math.tanh %32 : vector<16x128xbf16>
    %40 = arith.mulf %38, %39 : vector<16x128xbf16>
    %41 = arith.negf %33 : vector<16x128xbf16>
    %42 = math.exp %41 : vector<16x128xbf16>
    %cst_13 = arith.constant 1.000000e+00 : bf16
    %43 = vector.broadcast %cst_13 : bf16 to vector<16x128xbf16>
    %44 = arith.addf %43, %42 : vector<16x128xbf16>
    %45 = arith.divf %43, %44 : vector<16x128xbf16>
    %46 = math.tanh %40 : vector<16x128xbf16>
    %47 = arith.mulf %45, %46 : vector<16x128xbf16>
    %c0_14 = arith.constant 0 : index
    %c0_15 = arith.constant 0 : index
    %48 = vector.load %arg6[%c0_14, %c0_15] : memref<128x128xbf16, #tpu.memory_space<vmem>>, vector<128x128xbf16>
    %cst_16 = arith.constant dense<0.000000e+00> : vector<16x128xf32>
    %49 = tpu.matmul %47, %48, %cst_16 {dimension_numbers = #tpu.dot_dimension_numbers<[1], [0], [0], [1], [0, 0, 1, 1], [], []>} : vector<16x128xbf16>, vector<128x128xbf16>, vector<16x128xf32> -> vector<16x128xf32>
    %c0_17 = arith.constant 0 : index
    %c0_18 = arith.constant 0 : index
    %50 = vector.load %arg7[%c0_17, %c0_18] : memref<1x128xf32, #tpu.memory_space<vmem>>, vector<1x128xf32>
    %51 = vector.broadcast %50 : vector<1x128xf32> to vector<16x128xf32>
    %52 = arith.addf %49, %51 : vector<16x128xf32>
    %c0_19 = arith.constant 0 : index
    %c0_20 = arith.constant 0 : index
    %53 = vector.load %arg8[%c0_19, %c0_20] : memref<16x128xf32, #tpu.memory_space<vmem>>, vector<16x128xf32>
    tpu.vector_store %arg8[%c0_19, %c0_20], %52 {strides = array<i32>} : memref<16x128xf32, #tpu.memory_space<vmem>>, vector<16x128xf32>,
    return
  }
  func.func @transform_0(%arg0: i32) -> (i32, i32) {
    %c0_i32 = arith.constant 0 : i32
    %c0_i32_0 = arith.constant 0 : i32
    return %arg0, %c0_i32 : i32, i32
  }
  func.func @transform_1(%arg0: i32) -> (i32, i32) {
    %c0_i32 = arith.constant 0 : i32
    %c0_i32_0 = arith.constant 0 : i32
    %c0_i32_1 = arith.constant 0 : i32
    return %c0_i32, %c0_i32_0 : i32, i32
  }
  func.func @transform_2(%arg0: i32) -> (i32, i32) {
    %c0_i32 = arith.constant 0 : i32
    %c0_i32_0 = arith.constant 0 : i32
    %c0_i32_1 = arith.constant 0 : i32
    return %c0_i32, %c0_i32_0 : i32, i32
  }
  func.func @transform_3(%arg0: i32) -> (i32, i32) {
    %c0_i32 = arith.constant 0 : i32
    %c0_i32_0 = arith.constant 0 : i32
    %c0_i32_1 = arith.constant 0 : i32
    return %c0_i32, %c0_i32_0 : i32, i32
  }
  func.func @transform_4(%arg0: i32) -> (i32, i32) {
    %c0_i32 = arith.constant 0 : i32
    %c0_i32_0 = arith.constant 0 : i32
    %c0_i32_1 = arith.constant 0 : i32
    return %c0_i32, %c0_i32_0 : i32, i32
  }
  func.func @transform_5(%arg0: i32) -> (i32, i32) {
    %c0_i32 = arith.constant 0 : i32
    %c0_i32_0 = arith.constant 0 : i32
    %c0_i32_1 = arith.constant 0 : i32
    return %c0_i32, %c0_i32_0 : i32, i32
  }
  func.func @transform_6(%arg0: i32) -> (i32, i32) {
    %c0_i32 = arith.constant 0 : i32
    %c0_i32_0 = arith.constant 0 : i32
    %c0_i32_1 = arith.constant 0 : i32
    return %c0_i32, %c0_i32_0 : i32, i32
  }
  func.func @transform_7(%arg0: i32) -> (i32, i32) {
    %c0_i32 = arith.constant 0 : i32
    %c0_i32_0 = arith.constant 0 : i32
    return %arg0, %c0_i32 : i32, i32
  }
}

module attributes {stable_mosaic.version = 11 : i64} {
  func.func @kernel(%arg0: i32, %arg1: memref<16x16xf32, #tpu.memory_space<vmem>>, %arg2: memref<16x384xbf16, #tpu.memory_space<vmem>>, %arg3: memref<1x384xf32, #tpu.memory_space<vmem>>, %arg4: memref<128x384xbf16, #tpu.memory_space<vmem>>, %arg5: memref<1x384xf32, #tpu.memory_space<vmem>>, %arg6: memref<128x128xbf16, #tpu.memory_space<vmem>>, %arg7: memref<1x128xf32, #tpu.memory_space<vmem>>, %arg8: memref<16x128xf32, #tpu.memory_space<vmem>>) attributes {dimension_semantics = [#tpu.dimension_semantics<parallel>], iteration_bounds = array<i64: 2>, scalar_prefetch = 0 : i64, scratch_operands = 0 : i64, tpu.core_type = #tpu.core_type<tc>, window_params = [{transform_indices = @transform_0, window_bounds = array<i64: 16, 16>}, {pipeline_mode = #tpu.pipeline_mode<synchronous>, transform_indices = @transform_1, window_bounds = array<i64: 16, 384>}, {pipeline_mode = #tpu.pipeline_mode<synchronous>, transform_indices = @transform_2, window_bounds = array<i64: 1, 384>}, {pipeline_mode = #tpu.pipeline_mode<synchronous>, transform_indices = @transform_3, window_bounds = array<i64: 128, 384>}, {pipeline_mode = #tpu.pipeline_mode<synchronous>, transform_indices = @transform_4, window_bounds = array<i64: 1, 384>}, {pipeline_mode = #tpu.pipeline_mode<synchronous>, transform_indices = @transform_5, window_bounds = array<i64: 128, 128>}, {pipeline_mode = #tpu.pipeline_mode<synchronous>, transform_indices = @transform_6, window_bounds = array<i64: 1, 128>}, {transform_indices = @transform_7, window_bounds = array<i64: 16, 128>}]} {
    %c0 = arith.constant 0 : index
    %c0_0 = arith.constant 0 : index
    %0 = vector.load %arg1[%c0, %c0_0] : memref<16x16xf32, #tpu.memory_space<vmem>>, vector<16x16xf32>
    %1 = arith.truncf %0 : vector<16x16xf32> to vector<16x16xbf16>
    %c0_1 = arith.constant 0 : index
    %c0_2 = arith.constant 0 : index
    %2 = vector.load %arg2[%c0_1, %c0_2] : memref<16x384xbf16, #tpu.memory_space<vmem>>, vector<16x384xbf16>
    %cst = arith.constant dense<0.000000e+00> : vector<16x384xf32>
    %3 = tpu.matmul %1, %2, %cst {dimension_numbers = #tpu.dot_dimension_numbers<[1], [0], [0], [1], [0, 0, 1, 1], [], []>} : vector<16x16xbf16>, vector<16x384xbf16>, vector<16x384xf32> -> vector<16x384xf32>
    %c0_3 = arith.constant 0 : index
    %c0_4 = arith.constant 0 : index
    %4 = vector.load %arg3[%c0_3, %c0_4] : memref<1x384xf32, #tpu.memory_space<vmem>>, vector<1x384xf32>
    %5 = vector.broadcast %4 : vector<1x384xf32> to vector<16x384xf32>
    %6 = arith.addf %3, %5 : vector<16x384xf32>
    %7 = arith.truncf %6 : vector<16x384xf32> to vector<16x384xbf16>
    %8 = vector.extract_strided_slice %7 {offsets = [0, 0], sizes = [16, 128], strides = [1, 1]} : vector<16x384xbf16> to vector<16x128xbf16>
    %9 = vector.extract_strided_slice %7 {offsets = [0, 128], sizes = [16, 128], strides = [1, 1]} : vector<16x384xbf16> to vector<16x128xbf16>
    %10 = vector.extract_strided_slice %7 {offsets = [0, 256], sizes = [16, 128], strides = [1, 1]} : vector<16x384xbf16> to vector<16x128xbf16>
    %11 = arith.negf %8 : vector<16x128xbf16>
    %12 = math.exp %11 : vector<16x128xbf16>
    %cst_5 = arith.constant 1.000000e+00 : bf16
    %13 = vector.broadcast %cst_5 : bf16 to vector<16x128xbf16>
    %14 = arith.addf %13, %12 : vector<16x128xbf16>
    %15 = arith.divf %13, %14 : vector<16x128xbf16>
    %16 = math.tanh %9 : vector<16x128xbf16>
    %17 = arith.mulf %15, %16 : vector<16x128xbf16>
    %18 = arith.negf %10 : vector<16x128xbf16>
    %19 = math.exp %18 : vector<16x128xbf16>
    %cst_6 = arith.constant 1.000000e+00 : bf16
    %20 = vector.broadcast %cst_6 : bf16 to vector<16x128xbf16>
    %21 = arith.addf %20, %19 : vector<16x128xbf16>
    %22 = arith.divf %20, %21 : vector<16x128xbf16>
    %23 = math.tanh %17 : vector<16x128xbf16>
    %24 = arith.mulf %22, %23 : vector<16x128xbf16>
    %c0_7 = arith.constant 0 : index
    %c0_8 = arith.constant 0 : index
    %25 = vector.load %arg4[%c0_7, %c0_8] : memref<128x384xbf16, #tpu.memory_space<vmem>>, vector<128x384xbf16>
    %cst_9 = arith.constant dense<0.000000e+00> : vector<16x384xf32>
    %26 = tpu.matmul %24, %25, %cst_9 {dimension_numbers = #tpu.dot_dimension_numbers<[1], [0], [0], [1], [0, 0, 1, 1], [], []>} : vector<16x128xbf16>, vector<128x384xbf16>, vector<16x384xf32> -> vector<16x384xf32>
    %c0_10 = arith.constant 0 : index
    %c0_11 = arith.constant 0 : index
    %27 = vector.load %arg5[%c0_10, %c0_11] : memref<1x384xf32, #tpu.memory_space<vmem>>, vector<1x384xf32>
    %28 = vector.broadcast %27 : vector<1x384xf32> to vector<16x384xf32>
    %29 = arith.addf %26, %28 : vector<16x384xf32>
    %30 = arith.truncf %29 : vector<16x384xf32> to vector<16x384xbf16>
    %31 = vector.extract_strided_slice %30 {offsets = [0, 0], sizes = [16, 128], strides = [1, 1]} : vector<16x384xbf16> to vector<16x128xbf16>
    %32 = vector.extract_strided_slice %30 {offsets = [0, 128], sizes = [16, 128], strides = [1, 1]} : vector<16x384xbf16> to vector<16x128xbf16>
    %33 = vector.extract_strided_slice %30 {offsets = [0, 256], sizes = [16, 128], strides = [1, 1]} : vector<16x384xbf16> to vector<16x128xbf16>
    %34 = arith.negf %31 : vector<16x128xbf16>
    %35 = math.exp %34 : vector<16x128xbf16>
    %cst_12 = arith.constant 1.000000e+00 : bf16
    %36 = vector.broadcast %cst_12 : bf16 to vector<16x128xbf16>
    %37 = arith.addf %36, %35 : vector<16x128xbf16>
    %38 = arith.divf %36, %37 : vector<16x128xbf16>
    %39 = math.tanh %32 : vector<16x128xbf16>
    %40 = arith.mulf %38, %39 : vector<16x128xbf16>
    %41 = arith.negf %33 : vector<16x128xbf16>
    %42 = math.exp %41 : vector<16x128xbf16>
    %cst_13 = arith.constant 1.000000e+00 : bf16
    %43 = vector.broadcast %cst_13 : bf16 to vector<16x128xbf16>
    %44 = arith.addf %43, %42 : vector<16x128xbf16>
    %45 = arith.divf %43, %44 : vector<16x128xbf16>
    %46 = math.tanh %40 : vector<16x128xbf16>
    %47 = arith.mulf %45, %46 : vector<16x128xbf16>
    %c0_14 = arith.constant 0 : index
    %c0_15 = arith.constant 0 : index
    %48 = vector.load %arg6[%c0_14, %c0_15] : memref<128x128xbf16, #tpu.memory_space<vmem>>, vector<128x128xbf16>
    %cst_16 = arith.constant dense<0.000000e+00> : vector<16x128xf32>
    %49 = tpu.matmul %47, %48, %cst_16 {dimension_numbers = #tpu.dot_dimension_numbers<[1], [0], [0], [1], [0, 0, 1, 1], [], []>} : vector<16x128xbf16>, vector<128x128xbf16>, vector<16x128xf32> -> vector<16x128xf32>
    %c0_17 = arith.constant 0 : index
    %c0_18 = arith.constant 0 : index
    %50 = vector.load %arg7[%c0_17, %c0_18] : memref<1x128xf32, #tpu.memory_space<vmem>>, vector<1x128xf32>
    %51 = vector.broadcast %50 : vector<1x128xf32> to vector<16x128xf32>
    %52 = arith.addf %49, %51 : vector<16x128xf32>
    %c0_19 = arith.constant 0 : index
    %c0_20 = arith.constant 0 : index
    %53 = vector.load %arg8[%c0_19, %c0_20] : memref<16x128xf32, #tpu.memory_space<vmem>>, vector<16x128xf32>
    tpu.vector_store %arg8[%c0_19, %c0_20], %52 {strides = array<i32>} : memref<16x128xf32, #tpu.memory_space<vmem>>, vector<16x128xf32>,
    return
  }
  func.func @transform_0(%arg0: i32) -> (i32, i32) {
    %c0_i32 = arith.constant 0 : i32
    %c0_i32_0 = arith.constant 0 : i32
    return %arg0, %c0_i32 : i32, i32
  }
  func.func @transform_1(%arg0: i32) -> (i32, i32) {
    %c0_i32 = arith.constant 0 : i32
    %c0_i32_0 = arith.constant 0 : i32
    %c0_i32_1 = arith.constant 0 : i32
    return %c0_i32, %c0_i32_0 : i32, i32
  }
  func.func @transform_2(%arg0: i32) -> (i32, i32) {
    %c0_i32 = arith.constant 0 : i32
    %c0_i32_0 = arith.constant 0 : i32
    %c0_i32_1 = arith.constant 0 : i32
    return %c0_i32, %c0_i32_0 : i32, i32
  }
  func.func @transform_3(%arg0: i32) -> (i32, i32) {
    %c0_i32 = arith.constant 0 : i32
    %c0_i32_0 = arith.constant 0 : i32
    %c0_i32_1 = arith.constant 0 : i32
    return %c0_i32, %c0_i32_0 : i32, i32
  }
  func.func @transform_4(%arg0: i32) -> (i32, i32) {
    %c0_i32 = arith.constant 0 : i32
    %c0_i32_0 = arith.constant 0 : i32
    %c0_i32_1 = arith.constant 0 : i32
    return %c0_i32, %c0_i32_0 : i32, i32
  }
  func.func @transform_5(%arg0: i32) -> (i32, i32) {
    %c0_i32 = arith.constant 0 : i32
    %c0_i32_0 = arith.constant 0 : i32
    %c0_i32_1 = arith.constant 0 : i32
    return %c0_i32, %c0_i32_0 : i32, i32
  }
  func.func @transform_6(%arg0: i32) -> (i32, i32) {
    %c0_i32 = arith.constant 0 : i32
    %c0_i32_0 = arith.constant 0 : i32
    %c0_i32_1 = arith.constant 0 : i32
    return %c0_i32, %c0_i32_0 : i32, i32
  }
  func.func @transform_7(%arg0: i32) -> (i32, i32) {
    %c0_i32 = arith.constant 0 : i32
    %c0_i32_0 = arith.constant 0 : i32
    return %arg0, %c0_i32 : i32, i32
  }
}

</mosaic_0001>

<bundles_post_ra>
// kernel: tpu_custom_call.1
= control target key start
LH: loop header
LB: loop body
LE: loop exit
PB: predicated region body
PF: predicated region fallthrough
CT: control target
= control target key end

     0   :  { %12 = vsyncpa [#allocation3], 0  ;;  %s1591_s0 = inlined_call_operand.vmem [shape: f32[32,16], index: 0, kind: input, shape index: {}]   ;;  %s1592_s1 = inlined_call_operand.vmem [shape: bf16[16,384], index: 1, kind: input, shape index: {}]   ;;  %s1593_s2 = inlined_call_operand.vmem [shape: f32[1,384], index: 2, kind: input, shape index: {}]   ;;  %s1594_s3 = inlined_call_operand.hbm [shape: bf16[128,384], index: 3, kind: input, shape index: {}]   ;;  %s1595_s4 = inlined_call_operand.vmem [shape: f32[1,384], index: 4, kind: input, shape index: {}]   ;;  %s1596_s5 = inlined_call_operand.hbm [shape: bf16[128,128], index: 5, kind: input, shape index: {}]   ;;  %s1597_s6 = inlined_call_operand.vmem [shape: f32[1,128], index: 6, kind: input, shape index: {}]   ;;  %s1598_s7 = inlined_call_operand.hbm [shape: f32[32,128], index: 7, kind: output, shape index: {}]  }
   0x1   :  { %13 = vsyncpa [#allocation6], 0 }
   0x2   :  { %14 = vsyncpa [#allocation4], 0 }
   0x3   :  { %16 = vsyncpa [#allocation4 + $0x1], 0  ;;  %s1391_s24 = smov 0   ;;  %s1393_s25 = smov 0  }
   0x4   :  { %s1395_s26 = smov 0   ;;  %s1397_s27 = smov 0  }
   0x5 LB: > { %s1412_s28 = sadd.s32 4294967295, %s1337_s27   ;;  %s955_s29 = sadd.s32 4294967294, %s1337_s27   ;;  %s1337_s27 = sphi %s1397_s27, %s1612_s27   ;;  %s1333_s26 = sphi %s1395_s26, %s1611_s26   ;;  %s1329_s25 = sphi %s1393_s25, %s1610_s25   ;;  %s1325_s24 = sphi %s1391_s24, %s1609_s24  }
   0x6   : > { %s1416_s30 = sadd.s32 1, %s1337_s27   ;;  %s181_s8 = sadd.s32 1, %s1333_s26 }
   0x7   : > { %s178_s9 = ssub.s32 %s1337_s27, %s1416_s30  ;;  %p191_p0 = scmp.ne.s32.totalorder %s1333_s26, %s1329_s25 }
   0x8   : > { %p179_p1 = scmp.eq.s32.totalorder %s178_s9, 0  ;;  %p192_p2 = scmp.eq.s32.totalorder %s1412_s28, 1 }
   0x9   : > { %p197_p3 = scmp.ne.s32.totalorder %s1329_s25, %s1325_s24  ;;  %p198_p4 = scmp.eq.s32.totalorder %s955_s29, 1 }
   0xa   : > { %s1427_s10 = scalar_select %p179_p1, %s1333_s26, %s181_s8  }
   0xb   : > { %p1429_p5 = por %p192_p2, %p191_p0  ;;  %p1433_p6 = por %p198_p4, %p197_p3 }
   0xc   : > { %p956_p7 = scmp.ge.s32.totalorder %s1337_s27, 1  ;;  %p205_p8 = scmp.lt.s32.totalorder %s1337_s27, 3 }
   0xd   : > { %s1601_s12 = scalar_select %p1433_p6, 1, 0 }
   0xe   : > { %p1599_p9 = scmp.eq.s32.totalorder %s1412_s28, 0  ;;  %p1440_p10 = pnand %p956_p7, %p205_p8 }
   0xf   : > { %s1339_s14 = smov [#allocation2]   ;;  %s1340_s17 = smov [#allocation5]  }
  0x10   : > { %s223_s15 = sshll.u32 %s1339_s14, 4  ;;  %p1090_p11 = pneg %p1440_p10  ;;  %s224_s15 = int_to_ptr.vmem [resolvable:$true] %s223_s15 }
  0x11   : > { %s239_s18 = sshll.u32 %s1340_s17, 4  ;;  %s1228_s19 = scalar_lea.vmem %s224_s15, 3072  ;;  %s240_s18 = int_to_ptr.vmem [resolvable:$true] %s239_s18 }
  0x12   : > { %p1448_p12 = pnand %p1599_p9, %p1090_p11  ;;  %p1229_p0 = scmp.ne.s32.totalorder %s224_s15, %s1228_s19 }
  0x13   : > { %p1236_p3 = scmp.lt.s32.totalorder %s224_s15, %s224_s15  ;;  %p1237_p4 = scmp.lt.s32.totalorder %s1228_s19, %s1228_s19 }
  0x14   : > { %p1219_p13 = pneg %p1448_p12 }
  0x15   : > { %p1238_p7 = por %p1237_p4, %p1236_p3 }
  0x16   : > { %p1231_p1 = pnand %p1229_p0, %p1219_p13 }
  0x18   : > { %p1232_p2 = pneg %p1231_p1 }
  0x1a   : > { %p1239_p8 = pnand %p1238_p7, %p1232_p2 }
  0x1c   : > { %1242 = shalt.err (!%p1239_p8)
}
  0x1d   : > { %s1341_s20 = smov 192   ;;  %s1342_s21 = smov 12  }
  0x1e   : > { %1093 = dma.hbm_to_vmem [thread:$0]  (!%p1448_p12), %s1594_s3, 3072, %s224_s15, [#allocation3], %s1341_s20, %s1341_s20, %s1342_s21  }
  0x1f   : > { %s1254_s29 = scalar_lea.vmem %s240_s18, 1024  ;;  %p1262_p9 = scmp.lt.s32.totalorder %s240_s18, %s240_s18 }
  0x20   : > { %p1255_p11 = scmp.ne.s32.totalorder %s240_s18, %s1254_s29  ;;  %p1263_p6 = scmp.lt.s32.totalorder %s1254_s29, %s1254_s29 }
  0x22   : > { %p1257_p0 = pnand %p1255_p11, %p1219_p13  ;;  %p1264_p3 = por %p1263_p6, %p1262_p9 }
  0x24   : > { %p1258_p1 = pneg %p1257_p0 }
  0x26   : > { %p1265_p2 = pnand %p1264_p3, %p1258_p1 }
  0x28   : > { %1268 = shalt.err (!%p1265_p2)
}
  0x29   : > { %s1343_s8 = smov 64   ;;  %s1344_s9 = smov 4  }
  0x2a   : > { %1096 = dma.hbm_to_vmem [thread:$0]  (!%p1448_p12), %s1596_s5, 1024, %s240_s18, [#allocation6], %s1343_s8, %s1343_s8, %s1344_s9  }
  0x2b   : > { %267 = sbr.rel (%p1440_p10) target bundleno = 786 (0x312), region = 48  ;;  %p1604_p4 = scmp.eq.s32.totalorder (!%p1440_p10), %s1412_s28, 0 }
  0x30   : > { %1312 = dma.done.wait (%p1604_p4), [#allocation3], 3072   ;;  %p1605_p13 = pmov %p1604_p4 }
  0x31   : > { %p1606_p6 = pmov %p1604_p4 }
  0x32   : > { %1314 = vsyncadd (%p1605_p13), [#allocation3], 4294964224 }
  0x33   : > { %1316 = dma.done.wait (%p1606_p6), [#allocation6], 1024   ;;  %p1607_p9 = pmov %p1604_p4 }
  0x34   : > { %s964_s15 = sshll.u32 %s1412_s28, 1  ;;  %v1345_v0 = vmov 0   ;;  %v1149_v1 = vld [vmem:[%s1592_s1 + $0x4] ss:$12 sps:$4 sm:$0xff]   ;;  %v1151_v2 = vld [vmem:[%s1592_s1] ss:$12 sps:$4 sm:$0xff]   ;;  %v321_v32 = vlaneseq }
  0x35   : > { %1318 = vsyncadd (%p1607_p9), [#allocation6], 4294966272  ;;  %388 = vmatprep.mubr.bf16.mxu1 %v1345_v0  ;;  %p304_p12 = scmp.lt.s32.totalorder %s964_s15, 3  ;;  %670 = vmatprep.mubr.bf16.mxu0 %v1345_v0  ;;  %vm352_vm0 = vcmask 130048   ;;  %v1152_v6 = vld [vmem:[%s1592_s1 + $0x8] ss:$12 sps:$4 sm:$0xff]  }
  0x36   : > { %370 = vmatprep.subr.bf16.mxu1 %v1149_v1  ;;  %v1346_v7 = vmov 0.0   ;;  %vm1347_vm1 = vmmov 0   ;;  %v1153_v8 = vld [vmem:[#allocation2 + $0xac] ss:$12 sps:$4 sm:$0xff]   ;;  %v1155_v9 = vld [vmem:[#allocation2 + $0xa8] ss:$12 sps:$4 sm:$0xff]  }
  0x37   : > { %s1614_s15 = smov (!%p304_p12, %s964_s15), 3  ;;  %371 = vmatpush1.bf16.msra.mxu1 %v1151_v2  ;;  %v1156_v10 = vld [vmem:[#allocation2 + $0xb0] ss:$12 sps:$4 sm:$0xff]   ;;  %638 = vmatprep.subr.bf16.mxu0 %v1153_v8  ;;  %v1157_v11 = vld [vmem:[#allocation2 + $0x94] ss:$12 sps:$4 sm:$0xff]   ;;  %v1507_v33 = vshrl.u32 %v321_v32, 7 }
  0x38   : > { %s965_s13 = sshll.u32 %s1614_s15, 3  ;;  %1034 = vmatprep.subr.bf16.mxu1 %v1346_v7  ;;  %639 = vmatpush1.bf16.msra.mxu0 %v1155_v9  ;;  %v1159_v12 = vld [vmem:[#allocation2 + $0x90] ss:$12 sps:$4 sm:$0xff]   ;;  %v1160_v13 = vld [vmem:[#allocation2 + $0x98] ss:$12 sps:$4 sm:$0xff]   ;;  %s1013_s22 = sshll.u32 %s1412_s28, 8 }
  0x39   : > { %s307_s19 = scalar_lea.vmem %s1591_s0, %s965_s13  ;;  %640 = vmatprep.subr.bf16.mxu0 %v1157_v11  ;;  %v1161_v14 = vld [vmem:[#allocation2 + $0x7c] ss:$12 sps:$4 sm:$0xff]   ;;  %v1163_v15 = vld [vmem:[#allocation2 + $0x78] ss:$12 sps:$4 sm:$0xff]   ;;  %v1164_v16 = vld [vmem:[#allocation2 + $0x80] ss:$12 sps:$4 sm:$0xff]   ;;  %s1549_s8 = scalar_lea.hbm %s1598_s7, %s1013_s22 }
  0x3a   : > { %v312_v3 = vld [vmem:[%s307_s19] sm:$0xff]  ;;  %v313_v4 = vld [vmem:[%s307_s19 + $0x8] sm:$0xff]  ;;  %v1172_v22 = vld [vmem:[#allocation2 + $0x50] ss:$12 sps:$4 sm:$0xff]   ;;  %v323_v34 = vsub.s32 0, %v1507_v33  ;;  %v331_v39 = vsub.s32 2, %v1507_v33 }
  0x3b   : > { %v314_v5 = vpack.c.bf16 %v313_v4, %v312_v3  ;;  %v1165_v17 = vld [vmem:[#allocation2 + $0x64] ss:$12 sps:$4 sm:$0xff]   ;;  %v1167_v18 = vld [vmem:[#allocation2 + $0x60] ss:$12 sps:$4 sm:$0xff]   ;;  %v1168_v19 = vld [vmem:[#allocation2 + $0x68] ss:$12 sps:$4 sm:$0xff]  }
  0x3c   : > { %641 = vmatpush1.bf16.msra.mxu0 %v1159_v12  ;;  %v1169_v20 = vld [vmem:[#allocation2 + $0x4c] ss:$12 sps:$4 sm:$0xff]   ;;  %v1171_v21 = vld [vmem:[#allocation2 + $0x48] ss:$12 sps:$4 sm:$0xff]   ;;  %v1175_v24 = vld [vmem:[#allocation2 + $0x30] ss:$12 sps:$4 sm:$0xff]  }
  0x3d   : > { %969 = vmatmul.mubr.msk.bf16.vlgmr.msra.gmra.mxu1 %vm352_vm0, %v314_v5  ;;  %642 = vmatprep.subr.bf16.mxu0 %v1161_v14  ;;  %v1173_v23 = vld [vmem:[#allocation2 + $0x34] ss:$12 sps:$4 sm:$0xff]   ;;  %v1176_v25 = vld [vmem:[#allocation2 + $0x38] ss:$12 sps:$4 sm:$0xff]   ;;  %v1177_v26 = vld [vmem:[#allocation2 + $0x1c] ss:$12 sps:$4 sm:$0xff]  }
  0x3e   : > { %1035 = vmatpush3.bf16.msra.mxu1 %v1152_v6  ;;  %1036 = vmatprep.mubr.msk.bf16.mxu1 %vm1347_vm1, %v1346_v7  ;;  %v1179_v27 = vld [vmem:[#allocation2 + $0x18] ss:$12 sps:$4 sm:$0xff]   ;;  %v1180_v28 = vld [vmem:[#allocation2 + $0x20] ss:$12 sps:$4 sm:$0xff]   ;;  %v1184_v31 = vld [vmem:[#allocation2 + $0x8] ss:$12 sps:$4 sm:$0xff]  }
  0x3f   : > { %1040 = vmatprep.subr.bf16.mxu1 %v1346_v7  ;;  %v1181_v29 = vld [vmem:[#allocation2 + $0x4] ss:$12 sps:$4 sm:$0xff]   ;;  %v1183_v30 = vld [vmem:[#allocation2] ss:$12 sps:$4 sm:$0xff]   ;;  %v327_v54 = vsub.s32 1, %v1507_v33  ;;  %v1185_v9 = vld [vmem:[#allocation5 + $0x38] sm:$0xff]  }
  0x40   : > { %643 = vmatpush1.bf16.msra.mxu0 %v1163_v15  ;;  %v319_v35 = vld [vmem:[%s1593_s2] sm:$0x7]  ;;  %v1187_v11 = vld [vmem:[#allocation5 + $0x28] sm:$0xff]   ;;  %v1190_v14 = vld [vmem:[#allocation5 + $0x10] sm:$0xff]   ;;  %s300_s13 = sand.u32 1, %s1329_s25   ;;  %s1348_s28 = smov [#allocation7]  }
  0x41   : > { %644 = vmatprep.subr.bf16.mxu0 %v1165_v17  ;;  %v324_v37 = vrot.slane %v319_v35, %v323_v34  ;;  %v332_v45 = vrot.slane %v319_v35, %v331_v39  ;;  %v328_v56 = vrot.slane %v319_v35, %v327_v54  ;;  %v1188_v12 = vld [vmem:[#allocation5 + $0x20] sm:$0xff]   ;;  %v1191_v15 = vld [vmem:[#allocation5 + $0x8] sm:$0xff]   ;;  %s963_s16 = sshll.u32 %s300_s13, 4  ;;  %s1551_s9 = scalar_lea.sflag [#allocation4], %s300_s13 }
  0x42   : > { %v493_v17 = vld [vmem:[%s1595_s4] sm:$0x7]  ;;  %s302_s20 = scalar_lea.vmem [#allocation7], %s963_s16  ;;  %s1273_s17 = sshll.u32 %s1348_s28, 4  ;;  %s1274_s17 = int_to_ptr.vmem [resolvable:$false] %s1273_s17 }
  0x43   : > { %s871_s21 = sshll.u32 %s302_s20, 4  ;;  %s1275_s15 = scalar_lea.vmem %s1274_s17, 512  ;;  %s1544_s21 = int_to_ptr.vmem [resolvable:$true] %s871_s21 }
  0x44   : > { %645 = vmatpush1.bf16.msra.mxu0 %v1167_v18  ;;  %s1269_s14 = scalar_lea.vmem %s1544_s21, 256  ;;  %p1276_p11 = scmp.lt.s32.totalorder %s1544_s21, %s1274_s17 }
  0x45   : > { %1037 = vmatmul.mubr.msk.bf16.vlgmr.msra.gmra.mxu1 %vm352_vm0, %v314_v5  ;;  %646 = vmatprep.subr.bf16.mxu0 %v1169_v20  ;;  %v498_v20 = vrot.slane %v493_v17, %v323_v34  ;;  %v502_v34 = vrot.slane %v493_v17, %v327_v54  ;;  %p1270_p10 = scmp.ne.s32.totalorder %s1544_s21, %s1269_s14  ;;  %p1277_p0 = scmp.lt.s32.totalorder %s1275_s15, %s1269_s14 }
  0x46   : > { %1056 = vmatprep.mubr.msk.bf16.mxu1 %vm1347_vm1, %v1346_v7  ;;  %1041 = vmatpush3.bf16.msra.mxu1 %v1156_v10  ;;  %v1186_v10 = vld [vmem:[#allocation5 + $0x30] sm:$0xff]  }
  0x47   : > { %1042 = vmatprep.subr.bf16.mxu1 %v1346_v7  ;;  %p1271_p7 = pnand %p1270_p10, %p1429_p5  ;;  %p1278_p1 = por %p1277_p0, %p1276_p11 }
  0x48   : > { %647 = vmatpush1.bf16.msra.mxu0 %v1171_v21 }
  0x49   : > { %648 = vmatprep.subr.bf16.mxu0 %v1173_v23  ;;  %p1272_p8 = pneg %p1271_p7 }
  0x4a   : > { %1043 = vmatpush3.bf16.msra.mxu1 %v1160_v13  ;;  %v1189_v13 = vld [vmem:[#allocation5 + $0x18] sm:$0xff]  }
  0x4b   : > { %1044 = vmatprep.subr.bf16.mxu1 %v1346_v7  ;;  %p1279_p3 = pnand %p1278_p1, %p1272_p8 }
  0x4c   : > { %649 = vmatpush1.bf16.msra.mxu0 %v1175_v24 }
  0x4d   : > { %650 = vmatprep.subr.bf16.mxu0 %v1177_v26 }
  0x4e   : > { %1045 = vmatpush3.bf16.msra.mxu1 %v1164_v16  ;;  %v1192_v16 = vld [vmem:[#allocation5] sm:$0xff]  }
  0x4f   : > { %1046 = vmatprep.subr.bf16.mxu1 %v1346_v7 }
  0x50   : > { %651 = vmatpush1.bf16.msra.mxu0 %v1179_v27 }
  0x51   : > { %652 = vmatprep.subr.bf16.mxu0 %v1181_v29 }
  0x52   : > { %1047 = vmatpush3.bf16.msra.mxu1 %v1168_v19 }
  0x53   : > { %1048 = vmatprep.subr.bf16.mxu1 %v1346_v7 }
  0x54   : > { %653 = vmatpush1.bf16.msra.mxu0 %v1183_v30 }
  0x55   : > { %1060 = vmatprep.subr.bf16.mxu0 %v1346_v7 }
  0x56   : > { %1049 = vmatpush3.bf16.msra.mxu1 %v1172_v22 }
  0x57   : > { %1050 = vmatprep.subr.bf16.mxu1 %v1346_v7 }
  0x5a   : > { %1051 = vmatpush3.bf16.msra.mxu1 %v1176_v25 }
  0x5b   : > { %1052 = vmatprep.subr.bf16.mxu1 %v1346_v7 }
  0x5e   : > { %1053 = vmatpush3.bf16.msra.mxu1 %v1180_v28 }
  0x5f   : > { %1054 = vmatprep.subr.bf16.mxu1 %v1346_v7 }
  0x62   : > { %1055 = vmatpush3.bf16.msra.mxu1 %v1184_v31 }
  0xfd   : > { %v390_v36 = vpop.f32.mrf.mxu1 }
  0xfe   : > { %v391_v41 = vadd.f32 %v390_v36, %v324_v37 }
  0xff   : > { %v392_v38 = vpop.f32.mrf.mxu1 }
 0x100   : > { %v393_v58 = vadd.f32 %v392_v38, %v328_v56 }
 0x101   : > { %v394_v40 = vpop.f32.mrf.mxu1 }
 0x102   : > { %v395_v42 = vadd.f32 %v394_v40, %v324_v37 }
 0x103   : > { %v396_v43 = vpop.f32.mrf.mxu1 }
 0x104   : > { %v440_v44 = vpack.c.bf16 %v395_v42, %v391_v41  ;;  %v397_v57 = vadd.f32 %v396_v43, %v328_v56 }
 0x105   : > { %v433_v46 = vpop.f32.mrf.mxu1 }
 0x106   : > { %v971_v47 = vmul.bf16 3216621497, %v440_v44  ;;  %v434_v49 = vadd.f32 %v433_v46, %v332_v45  ;;  %v441_v61 = vpack.c.bf16 %v397_v57, %v393_v58 }
 0x107   : > { %v1038_v48 = vpop.f32.mrf.mxu1 }
 0x108   : > { %1193 = vpow.bf16 %v971_v47 }
 0x109   : > { %v436_v50 = vpop.f32.mrf.mxu1 }
 0x10a   : > { %v437_v51 = vadd.f32 %v436_v50, %v332_v45 }
 0x10b   : > { %v1039_v52 = vpop.f32.mrf.mxu1 }
 0x10c   : > { %v442_v53 = vpack.c.bf16 %v437_v51, %v434_v49  ;;  %v999_v51 = vld [vmem:[%s1597_s6] ss:$0 sm:$0xff] }
 0x10e   : > { %v972_v55 = vmul.bf16 3216621497, %v442_v53 }
 0x110   : > { %1195 = vpow.bf16 %v972_v55 }
 0x116   : > { %v1194_v59 = vpop.eup %1193 }
 0x117   : > { %v447_v60 = vadd.bf16 1065369472, %v1194_v59 }
 0x119   : > { %1197 = vrcp.bf16 %v447_v60 }
 0x11a   : > { %1199 = vtanh.bf16 %v441_v61 }
 0x11e   : > { %v1196_v62 = vpop.eup %1195 }
 0x11f   : > { %v456_v63 = vadd.bf16 1065369472, %v1196_v62 }
 0x121   : > { %1201 = vrcp.bf16 %v456_v63 }
 0x127   : > { %v1198_v0 = vpop.eup %1197 }
 0x128   : > { %v449_v1 = vmul.bf16 1065369472, %v1198_v0  ;;  %v1200_v2 = vpop.eup %1199 }
 0x12a   : > { %v451_v3 = vmul.bf16 %v1200_v2, %v449_v1 }
 0x12c   : > { %1203 = vtanh.bf16 %v451_v3 }
 0x12f   : > { %v1202_v4 = vpop.eup %1201 }
 0x130   : > { %v458_v5 = vmul.bf16 1065369472, %v1202_v4 }
 0x13a   : > { %v1204_v6 = vpop.eup %1203 }
 0x13b   : > { %v460_v8 = vmul.bf16 %v1204_v6, %v458_v5 }
 0x13d   : > { %671 = vmatmul.mubr.bf16.vlgmr.msra.gmra.mxu0 %v460_v8  ;;  %1057 = vmatmul.mubr.bf16.vlgmr.msra.gmra.mxu1 %v460_v8 }
 0x13e   : > { %1076 = vmatprep.mubr.msk.bf16.mxu0 %vm1347_vm1, %v1346_v7  ;;  %1061 = vmatpush3.bf16.msra.mxu0 %v1185_v9 }
 0x13f   : > { %1062 = vmatprep.subr.bf16.mxu0 %v1346_v7 }
 0x142   : > { %1063 = vmatpush3.bf16.msra.mxu0 %v1186_v10 }
 0x143   : > { %1064 = vmatprep.subr.bf16.mxu0 %v1346_v7 }
 0x146   : > { %1065 = vmatpush3.bf16.msra.mxu0 %v1187_v11 }
 0x147   : > { %1066 = vmatprep.subr.bf16.mxu0 %v1346_v7 }
 0x14a   : > { %1067 = vmatpush3.bf16.msra.mxu0 %v1188_v12 }
 0x14b   : > { %1068 = vmatprep.subr.bf16.mxu0 %v1346_v7 }
 0x14e   : > { %1069 = vmatpush3.bf16.msra.mxu0 %v1189_v13 }
 0x14f   : > { %1070 = vmatprep.subr.bf16.mxu0 %v1346_v7 }
 0x152   : > { %1071 = vmatpush3.bf16.msra.mxu0 %v1190_v14 }
 0x153   : > { %1072 = vmatprep.subr.bf16.mxu0 %v1346_v7 }
 0x156   : > { %1073 = vmatpush3.bf16.msra.mxu0 %v1191_v15 }
 0x157   : > { %1074 = vmatprep.subr.bf16.mxu0 %v1346_v7  ;;  %v506_v7 = vrot.slane %v493_v17, %v331_v39 }
 0x15a   : > { %1075 = vmatpush3.bf16.msra.mxu0 %v1192_v16 }
 0x1fd   : > { %v672_v18 = vpop.f32.mrf.mxu0  ;;  %v715_v19 = vpop.f32.mrf.mxu1 }
 0x1fe   : > { %v673_v25 = vadd.f32 %v672_v18, %v498_v20  ;;  %v716_v31 = vadd.f32 %v715_v19, %v506_v7 }
 0x1ff   : > { %v674_v21 = vpop.f32.mrf.mxu0  ;;  %v1058_v22 = vpop.f32.mrf.mxu1 }
 0x200   : > { %v675_v38 = vadd.f32 %v674_v21, %v502_v34 }
 0x201   : > { %v676_v23 = vpop.f32.mrf.mxu0  ;;  %v718_v24 = vpop.f32.mrf.mxu1 }
 0x202   : > { %v677_v26 = vadd.f32 %v676_v23, %v498_v20  ;;  %v719_v30 = vadd.f32 %v718_v24, %v506_v7 }
 0x203   : > { %v1059_v27 = vpop.f32.mrf.mxu1  ;;  %v678_v36 = vpop.f32.mrf.mxu0 }
 0x204   : > { %v722_v28 = vpack.c.bf16 %v677_v26, %v673_v25  ;;  %v724_v32 = vpack.c.bf16 %v719_v30, %v716_v31  ;;  %v679_v37 = vadd.f32 %v678_v36, %v502_v34 }
 0x206   : > { %v997_v29 = vmul.bf16 3216621497, %v722_v28  ;;  %v998_v35 = vmul.bf16 3216621497, %v724_v32  ;;  %v723_v42 = vpack.c.bf16 %v679_v37, %v675_v38 }
 0x208   : > { %1205 = vpow.bf16 %v997_v29 }
 0x209   : > { %1207 = vpow.bf16 %v998_v35 }
 0x216   : > { %v1206_v40 = vpop.eup %1205 }
 0x217   : > { %v729_v41 = vadd.bf16 1065369472, %v1206_v40  ;;  %v1208_v39 = vpop.eup %1207 }
 0x218   : > { %v738_v43 = vadd.bf16 1065369472, %v1208_v39 }
 0x219   : > { %1209 = vrcp.bf16 %v729_v41 }
 0x21a   : > { %1211 = vtanh.bf16 %v723_v42 }
 0x21b   : > { %1213 = vrcp.bf16 %v738_v43 }
 0x227   : > { %v1210_v44 = vpop.eup %1209 }
 0x228   : > { %v731_v45 = vmul.bf16 1065369472, %v1210_v44  ;;  %v1212_v46 = vpop.eup %1211 }
 0x229   : > { %v1214_v33 = vpop.eup %1213 }
 0x22a   : > { %v733_v47 = vmul.bf16 %v1212_v46, %v731_v45  ;;  %v740_v48 = vmul.bf16 1065369472, %v1214_v33 }
 0x22c   : > { %1215 = vtanh.bf16 %v733_v47 }
 0x23a   : > { %v1216_v49 = vpop.eup %1215 }
 0x23b   : > { %v742_v50 = vmul.bf16 %v1216_v49, %v740_v48 }
 0x23d   : > { %1077 = vmatmul.mubr.bf16.vlgmr.msra.gmra.mxu0 %v742_v50 }
 0x2fd   : > { %v848_v52 = vpop.f32.mrf.mxu0 }
 0x2fe   : > { %v849_v53 = vadd.f32 %v999_v51, %v848_v52 }
 0x2ff   : > { %v1078_v54 = vpop.f32.mrf.mxu0 }
 0x300   : > { %855 = vst [vmem:[%s302_s20] sm:$0xff] %v849_v53 }
 0x301   : > { %v851_v55 = vpop.f32.mrf.mxu0 }
 0x302   : > { %v852_v56 = vadd.f32 %v999_v51, %v851_v55 }
 0x303   : > { %v1079_v57 = vpop.f32.mrf.mxu0 }
 0x304   : > { %856 = vst [vmem:[%s302_s20 + $0x8] sm:$0xff] %v852_v56 }
 0x305   : > { %1282 = shalt.err (!%p1279_p3)
}
 0x306   : > { %s1283_s13 = scalar_lea.hbm %s1549_s8, 256  ;;  %s1287_s19 = scalar_lea.hbm %s1598_s7, 512 }
 0x307   : > { %p1284_p2 = scmp.ne.s32.totalorder %s1549_s8, %s1283_s13  ;;  %p1288_p6 = scmp.lt.s32.totalorder %s1549_s8, %s1598_s7 }
 0x308   : > { %p1289_p9 = scmp.lt.s32.totalorder %s1287_s19, %s1283_s13 }
 0x309   : > { %p1285_p4 = pnand %p1284_p2, %p1429_p5 }
 0x30a   : > { %p1290_p12 = por %p1289_p9, %p1288_p6 }
 0x30b   : > { %p1286_p13 = pneg %p1285_p4 }
 0x30d   : > { %p1291_p10 = pnand %p1290_p12, %p1286_p13 }
 0x30f   : > { %1294 = shalt.err (!%p1291_p10)
}
 0x310   : > { %s1349_s23 = smov 128   ;;  %s1350_s29 = smov 8  }
 0x311   : > { %1088 = dma.vmem_to_hbm [thread:$0]  (%p1429_p5), %s1544_s21, 256, %s1549_s8, %s1551_s9, %s1349_s23, %s1349_s23, %s1350_s29  }
 0x312 PF: > { %p1105_p7 = scmp.ge.s32.totalorder %s1337_s27, 2  ;;  %s886_s14 = sand.u32 1, %s1325_s24  }
 0x313   : > { %p1608_p8 = scmp.ne.s32.totalorder %s1601_s12, 0  ;;  %s887_s28 = scalar_lea.sflag [#allocation4], %s886_s14 }
 0x315   : > { %p1098_p11 = pnand %p1105_p7, %p1608_p8 }
 0x317   : > { %p1099_p0 = pneg %p1098_p11 }
 0x319   : > { %1320 = dma.done.wait (%p1099_p0), %s887_s28, 256  }
 0x31a   : > { %1322 = vsyncadd (%p1099_p0), %s887_s28, 4294967040  ;;  %p19_p1 = scmp.ge.s32.totalorder %s1416_s30, 4   ;;  %s1609_s24 = smov %s1329_s25 }
 0x31b   : > { %s1610_s25 = smov %s1333_s26  ;;  %s1611_s26 = smov %s1427_s10 }
 0x31c   : > { %s1612_s27 = smov %s1416_s30  ;;  %21 = sbr.rel (!%p19_p1) target bundleno = 5 (0x5), region = 92 }
 0x321   :  { %892 = vsyncpa [#allocation3], 1 }
 0x322   :  { %894 = vsyncpa [#allocation3 + $0x1], 1 }
 0x323   :  { %895 = vsyncpa [#allocation6], 1 }
 0x324   :  { %896 = vsyncpa [#allocation4], 1 }
 0x325   :  { %898 = vsyncpa [#allocation4 + $0x1], 1 }

// kernel: tpu_custom_call.1
= control target key start
LH: loop header
LB: loop body
LE: loop exit
PB: predicated region body
PF: predicated region fallthrough
CT: control target
= control target key end

     0   :  { %12 = vsyncpa [#allocation3], 0  ;;  %s1591_s0 = inlined_call_operand.vmem [shape: f32[32,16], index: 0, kind: input, shape index: {}]   ;;  %s1592_s1 = inlined_call_operand.vmem [shape: bf16[16,384], index: 1, kind: input, shape index: {}]   ;;  %s1593_s2 = inlined_call_operand.vmem [shape: f32[1,384], index: 2, kind: input, shape index: {}]   ;;  %s1594_s3 = inlined_call_operand.hbm [shape: bf16[128,384], index: 3, kind: input, shape index: {}]   ;;  %s1595_s4 = inlined_call_operand.vmem [shape: f32[1,384], index: 4, kind: input, shape index: {}]   ;;  %s1596_s5 = inlined_call_operand.hbm [shape: bf16[128,128], index: 5, kind: input, shape index: {}]   ;;  %s1597_s6 = inlined_call_operand.vmem [shape: f32[1,128], index: 6, kind: input, shape index: {}]   ;;  %s1598_s7 = inlined_call_operand.hbm [shape: f32[32,128], index: 7, kind: output, shape index: {}]  }
   0x1   :  { %13 = vsyncpa [#allocation6], 0 }
   0x2   :  { %14 = vsyncpa [#allocation4], 0 }
   0x3   :  { %16 = vsyncpa [#allocation4 + $0x1], 0  ;;  %s1391_s24 = smov 0   ;;  %s1393_s25 = smov 0  }
   0x4   :  { %s1395_s26 = smov 0   ;;  %s1397_s27 = smov 0  }
   0x5 LB: > { %s1412_s28 = sadd.s32 4294967295, %s1337_s27   ;;  %s955_s29 = sadd.s32 4294967294, %s1337_s27   ;;  %s1337_s27 = sphi %s1397_s27, %s1612_s27   ;;  %s1333_s26 = sphi %s1395_s26, %s1611_s26   ;;  %s1329_s25 = sphi %s1393_s25, %s1610_s25   ;;  %s1325_s24 = sphi %s1391_s24, %s1609_s24  }
   0x6   : > { %s1416_s30 = sadd.s32 1, %s1337_s27   ;;  %s181_s8 = sadd.s32 1, %s1333_s26 }
   0x7   : > { %s178_s9 = ssub.s32 %s1337_s27, %s1416_s30  ;;  %p191_p0 = scmp.ne.s32.totalorder %s1333_s26, %s1329_s25 }
   0x8   : > { %p179_p1 = scmp.eq.s32.totalorder %s178_s9, 0  ;;  %p192_p2 = scmp.eq.s32.totalorder %s1412_s28, 1 }
   0x9   : > { %p197_p3 = scmp.ne.s32.totalorder %s1329_s25, %s1325_s24  ;;  %p198_p4 = scmp.eq.s32.totalorder %s955_s29, 1 }
   0xa   : > { %s1427_s10 = scalar_select %p179_p1, %s1333_s26, %s181_s8  }
   0xb   : > { %p1429_p5 = por %p192_p2, %p191_p0  ;;  %p1433_p6 = por %p198_p4, %p197_p3 }
   0xc   : > { %p956_p7 = scmp.ge.s32.totalorder %s1337_s27, 1  ;;  %p205_p8 = scmp.lt.s32.totalorder %s1337_s27, 3 }
   0xd   : > { %s1601_s12 = scalar_select %p1433_p6, 1, 0 }
   0xe   : > { %p1599_p9 = scmp.eq.s32.totalorder %s1412_s28, 0  ;;  %p1440_p10 = pnand %p956_p7, %p205_p8 }
   0xf   : > { %s1339_s14 = smov [#allocation2]   ;;  %s1340_s17 = smov [#allocation5]  }
  0x10   : > { %s223_s15 = sshll.u32 %s1339_s14, 4  ;;  %p1090_p11 = pneg %p1440_p10  ;;  %s224_s15 = int_to_ptr.vmem [resolvable:$true] %s223_s15 }
  0x11   : > { %s239_s18 = sshll.u32 %s1340_s17, 4  ;;  %s1228_s19 = scalar_lea.vmem %s224_s15, 3072  ;;  %s240_s18 = int_to_ptr.vmem [resolvable:$true] %s239_s18 }
  0x12   : > { %p1448_p12 = pnand %p1599_p9, %p1090_p11  ;;  %p1229_p0 = scmp.ne.s32.totalorder %s224_s15, %s1228_s19 }
  0x13   : > { %p1236_p3 = scmp.lt.s32.totalorder %s224_s15, %s224_s15  ;;  %p1237_p4 = scmp.lt.s32.totalorder %s1228_s19, %s1228_s19 }
  0x14   : > { %p1219_p13 = pneg %p1448_p12 }
  0x15   : > { %p1238_p7 = por %p1237_p4, %p1236_p3 }
  0x16   : > { %p1231_p1 = pnand %p1229_p0, %p1219_p13 }
  0x18   : > { %p1232_p2 = pneg %p1231_p1 }
  0x1a   : > { %p1239_p8 = pnand %p1238_p7, %p1232_p2 }
  0x1c   : > { %1242 = shalt.err (!%p1239_p8)
}
  0x1d   : > { %s1341_s20 = smov 192   ;;  %s1342_s21 = smov 12  }
  0x1e   : > { %1093 = dma.hbm_to_vmem [thread:$0]  (!%p1448_p12), %s1594_s3, 3072, %s224_s15, [#allocation3], %s1341_s20, %s1341_s20, %s1342_s21  }
  0x1f   : > { %s1254_s29 = scalar_lea.vmem %s240_s18, 1024  ;;  %p1262_p9 = scmp.lt.s32.totalorder %s240_s18, %s240_s18 }
  0x20   : > { %p1255_p11 = scmp.ne.s32.totalorder %s240_s18, %s1254_s29  ;;  %p1263_p6 = scmp.lt.s32.totalorder %s1254_s29, %s1254_s29 }
  0x22   : > { %p1257_p0 = pnand %p1255_p11, %p1219_p13  ;;  %p1264_p3 = por %p1263_p6, %p1262_p9 }
  0x24   : > { %p1258_p1 = pneg %p1257_p0 }
  0x26   : > { %p1265_p2 = pnand %p1264_p3, %p1258_p1 }
  0x28   : > { %1268 = shalt.err (!%p1265_p2)
}
  0x29   : > { %s1343_s8 = smov 64   ;;  %s1344_s9 = smov 4  }
  0x2a   : > { %1096 = dma.hbm_to_vmem [thread:$0]  (!%p1448_p12), %s1596_s5, 1024, %s240_s18, [#allocation6], %s1343_s8, %s1343_s8, %s1344_s9  }
  0x2b   : > { %267 = sbr.rel (%p1440_p10) target bundleno = 786 (0x312), region = 48  ;;  %p1604_p4 = scmp.eq.s32.totalorder (!%p1440_p10), %s1412_s28, 0 }
  0x30   : > { %1312 = dma.done.wait (%p1604_p4), [#allocation3], 3072   ;;  %p1605_p13 = pmov %p1604_p4 }
  0x31   : > { %p1606_p6 = pmov %p1604_p4 }
  0x32   : > { %1314 = vsyncadd (%p1605_p13), [#allocation3], 4294964224 }
  0x33   : > { %1316 = dma.done.wait (%p1606_p6), [#allocation6], 1024   ;;  %p1607_p9 = pmov %p1604_p4 }
  0x34   : > { %s964_s15 = sshll.u32 %s1412_s28, 1  ;;  %v1345_v0 = vmov 0   ;;  %v1149_v1 = vld [vmem:[%s1592_s1 + $0x4] ss:$12 sps:$4 sm:$0xff]   ;;  %v1151_v2 = vld [vmem:[%s1592_s1] ss:$12 sps:$4 sm:$0xff]   ;;  %v321_v32 = vlaneseq }
  0x35   : > { %1318 = vsyncadd (%p1607_p9), [#allocation6], 4294966272  ;;  %388 = vmatprep.mubr.bf16.mxu1 %v1345_v0  ;;  %p304_p12 = scmp.lt.s32.totalorder %s964_s15, 3  ;;  %670 = vmatprep.mubr.bf16.mxu0 %v1345_v0  ;;  %vm352_vm0 = vcmask 130048   ;;  %v1152_v6 = vld [vmem:[%s1592_s1 + $0x8] ss:$12 sps:$4 sm:$0xff]  }
  0x36   : > { %370 = vmatprep.subr.bf16.mxu1 %v1149_v1  ;;  %v1346_v7 = vmov 0.0   ;;  %vm1347_vm1 = vmmov 0   ;;  %v1153_v8 = vld [vmem:[#allocation2 + $0xac] ss:$12 sps:$4 sm:$0xff]   ;;  %v1155_v9 = vld [vmem:[#allocation2 + $0xa8] ss:$12 sps:$4 sm:$0xff]  }
  0x37   : > { %s1614_s15 = smov (!%p304_p12, %s964_s15), 3  ;;  %371 = vmatpush1.bf16.msra.mxu1 %v1151_v2  ;;  %v1156_v10 = vld [vmem:[#allocation2 + $0xb0] ss:$12 sps:$4 sm:$0xff]   ;;  %638 = vmatprep.subr.bf16.mxu0 %v1153_v8  ;;  %v1157_v11 = vld [vmem:[#allocation2 + $0x94] ss:$12 sps:$4 sm:$0xff]   ;;  %v1507_v33 = vshrl.u32 %v321_v32, 7 }
  0x38   : > { %s965_s13 = sshll.u32 %s1614_s15, 3  ;;  %1034 = vmatprep.subr.bf16.mxu1 %v1346_v7  ;;  %639 = vmatpush1.bf16.msra.mxu0 %v1155_v9  ;;  %v1159_v12 = vld [vmem:[#allocation2 + $0x90] ss:$12 sps:$4 sm:$0xff]   ;;  %v1160_v13 = vld [vmem:[#allocation2 + $0x98] ss:$12 sps:$4 sm:$0xff]   ;;  %s1013_s22 = sshll.u32 %s1412_s28, 8 }
  0x39   : > { %s307_s19 = scalar_lea.vmem %s1591_s0, %s965_s13  ;;  %640 = vmatprep.subr.bf16.mxu0 %v1157_v11  ;;  %v1161_v14 = vld [vmem:[#allocation2 + $0x7c] ss:$12 sps:$4 sm:$0xff]   ;;  %v1163_v15 = vld [vmem:[#allocation2 + $0x78] ss:$12 sps:$4 sm:$0xff]   ;;  %v1164_v16 = vld [vmem:[#allocation2 + $0x80] ss:$12 sps:$4 sm:$0xff]   ;;  %s1549_s8 = scalar_lea.hbm %s1598_s7, %s1013_s22 }
  0x3a   : > { %v312_v3 = vld [vmem:[%s307_s19] sm:$0xff]  ;;  %v313_v4 = vld [vmem:[%s307_s19 + $0x8] sm:$0xff]  ;;  %v1172_v22 = vld [vmem:[#allocation2 + $0x50] ss:$12 sps:$4 sm:$0xff]   ;;  %v323_v34 = vsub.s32 0, %v1507_v33  ;;  %v331_v39 = vsub.s32 2, %v1507_v33 }
  0x3b   : > { %v314_v5 = vpack.c.bf16 %v313_v4, %v312_v3  ;;  %v1165_v17 = vld [vmem:[#allocation2 + $0x64] ss:$12 sps:$4 sm:$0xff]   ;;  %v1167_v18 = vld [vmem:[#allocation2 + $0x60] ss:$12 sps:$4 sm:$0xff]   ;;  %v1168_v19 = vld [vmem:[#allocation2 + $0x68] ss:$12 sps:$4 sm:$0xff]  }
  0x3c   : > { %641 = vmatpush1.bf16.msra.mxu0 %v1159_v12  ;;  %v1169_v20 = vld [vmem:[#allocation2 + $0x4c] ss:$12 sps:$4 sm:$0xff]   ;;  %v1171_v21 = vld [vmem:[#allocation2 + $0x48] ss:$12 sps:$4 sm:$0xff]   ;;  %v1175_v24 = vld [vmem:[#allocation2 + $0x30] ss:$12 sps:$4 sm:$0xff]  }
  0x3d   : > { %969 = vmatmul.mubr.msk.bf16.vlgmr.msra.gmra.mxu1 %vm352_vm0, %v314_v5  ;;  %642 = vmatprep.subr.bf16.mxu0 %v1161_v14  ;;  %v1173_v23 = vld [vmem:[#allocation2 + $0x34] ss:$12 sps:$4 sm:$0xff]   ;;  %v1176_v25 = vld [vmem:[#allocation2 + $0x38] ss:$12 sps:$4 sm:$0xff]   ;;  %v1177_v26 = vld [vmem:[#allocation2 + $0x1c] ss:$12 sps:$4 sm:$0xff]  }
  0x3e   : > { %1035 = vmatpush3.bf16.msra.mxu1 %v1152_v6  ;;  %1036 = vmatprep.mubr.msk.bf16.mxu1 %vm1347_vm1, %v1346_v7  ;;  %v1179_v27 = vld [vmem:[#allocation2 + $0x18] ss:$12 sps:$4 sm:$0xff]   ;;  %v1180_v28 = vld [vmem:[#allocation2 + $0x20] ss:$12 sps:$4 sm:$0xff]   ;;  %v1184_v31 = vld [vmem:[#allocation2 + $0x8] ss:$12 sps:$4 sm:$0xff]  }
  0x3f   : > { %1040 = vmatprep.subr.bf16.mxu1 %v1346_v7  ;;  %v1181_v29 = vld [vmem:[#allocation2 + $0x4] ss:$12 sps:$4 sm:$0xff]   ;;  %v1183_v30 = vld [vmem:[#allocation2] ss:$12 sps:$4 sm:$0xff]   ;;  %v327_v54 = vsub.s32 1, %v1507_v33  ;;  %v1185_v9 = vld [vmem:[#allocation5 + $0x38] sm:$0xff]  }
  0x40   : > { %643 = vmatpush1.bf16.msra.mxu0 %v1163_v15  ;;  %v319_v35 = vld [vmem:[%s1593_s2] sm:$0x7]  ;;  %v1187_v11 = vld [vmem:[#allocation5 + $0x28] sm:$0xff]   ;;  %v1190_v14 = vld [vmem:[#allocation5 + $0x10] sm:$0xff]   ;;  %s300_s13 = sand.u32 1, %s1329_s25   ;;  %s1348_s28 = smov [#allocation7]  }
  0x41   : > { %644 = vmatprep.subr.bf16.mxu0 %v1165_v17  ;;  %v324_v37 = vrot.slane %v319_v35, %v323_v34  ;;  %v332_v45 = vrot.slane %v319_v35, %v331_v39  ;;  %v328_v56 = vrot.slane %v319_v35, %v327_v54  ;;  %v1188_v12 = vld [vmem:[#allocation5 + $0x20] sm:$0xff]   ;;  %v1191_v15 = vld [vmem:[#allocation5 + $0x8] sm:$0xff]   ;;  %s963_s16 = sshll.u32 %s300_s13, 4  ;;  %s1551_s9 = scalar_lea.sflag [#allocation4], %s300_s13 }
  0x42   : > { %v493_v17 = vld [vmem:[%s1595_s4] sm:$0x7]  ;;  %s302_s20 = scalar_lea.vmem [#allocation7], %s963_s16  ;;  %s1273_s17 = sshll.u32 %s1348_s28, 4  ;;  %s1274_s17 = int_to_ptr.vmem [resolvable:$false] %s1273_s17 }
  0x43   : > { %s871_s21 = sshll.u32 %s302_s20, 4  ;;  %s1275_s15 = scalar_lea.vmem %s1274_s17, 512  ;;  %s1544_s21 = int_to_ptr.vmem [resolvable:$true] %s871_s21 }
  0x44   : > { %645 = vmatpush1.bf16.msra.mxu0 %v1167_v18  ;;  %s1269_s14 = scalar_lea.vmem %s1544_s21, 256  ;;  %p1276_p11 = scmp.lt.s32.totalorder %s1544_s21, %s1274_s17 }
  0x45   : > { %1037 = vmatmul.mubr.msk.bf16.vlgmr.msra.gmra.mxu1 %vm352_vm0, %v314_v5  ;;  %646 = vmatprep.subr.bf16.mxu0 %v1169_v20  ;;  %v498_v20 = vrot.slane %v493_v17, %v323_v34  ;;  %v502_v34 = vrot.slane %v493_v17, %v327_v54  ;;  %p1270_p10 = scmp.ne.s32.totalorder %s1544_s21, %s1269_s14  ;;  %p1277_p0 = scmp.lt.s32.totalorder %s1275_s15, %s1269_s14 }
  0x46   : > { %1056 = vmatprep.mubr.msk.bf16.mxu1 %vm1347_vm1, %v1346_v7  ;;  %1041 = vmatpush3.bf16.msra.mxu1 %v1156_v10  ;;  %v1186_v10 = vld [vmem:[#allocation5 + $0x30] sm:$0xff]  }
  0x47   : > { %1042 = vmatprep.subr.bf16.mxu1 %v1346_v7  ;;  %p1271_p7 = pnand %p1270_p10, %p1429_p5  ;;  %p1278_p1 = por %p1277_p0, %p1276_p11 }
  0x48   : > { %647 = vmatpush1.bf16.msra.mxu0 %v1171_v21 }
  0x49   : > { %648 = vmatprep.subr.bf16.mxu0 %v1173_v23  ;;  %p1272_p8 = pneg %p1271_p7 }
  0x4a   : > { %1043 = vmatpush3.bf16.msra.mxu1 %v1160_v13  ;;  %v1189_v13 = vld [vmem:[#allocation5 + $0x18] sm:$0xff]  }
  0x4b   : > { %1044 = vmatprep.subr.bf16.mxu1 %v1346_v7  ;;  %p1279_p3 = pnand %p1278_p1, %p1272_p8 }
  0x4c   : > { %649 = vmatpush1.bf16.msra.mxu0 %v1175_v24 }
  0x4d   : > { %650 = vmatprep.subr.bf16.mxu0 %v1177_v26 }
  0x4e   : > { %1045 = vmatpush3.bf16.msra.mxu1 %v1164_v16  ;;  %v1192_v16 = vld [vmem:[#allocation5] sm:$0xff]  }
  0x4f   : > { %1046 = vmatprep.subr.bf16.mxu1 %v1346_v7 }
  0x50   : > { %651 = vmatpush1.bf16.msra.mxu0 %v1179_v27 }
  0x51   : > { %652 = vmatprep.subr.bf16.mxu0 %v1181_v29 }
  0x52   : > { %1047 = vmatpush3.bf16.msra.mxu1 %v1168_v19 }
  0x53   : > { %1048 = vmatprep.subr.bf16.mxu1 %v1346_v7 }
  0x54   : > { %653 = vmatpush1.bf16.msra.mxu0 %v1183_v30 }
  0x55   : > { %1060 = vmatprep.subr.bf16.mxu0 %v1346_v7 }
  0x56   : > { %1049 = vmatpush3.bf16.msra.mxu1 %v1172_v22 }
  0x57   : > { %1050 = vmatprep.subr.bf16.mxu1 %v1346_v7 }
  0x5a   : > { %1051 = vmatpush3.bf16.msra.mxu1 %v1176_v25 }
  0x5b   : > { %1052 = vmatprep.subr.bf16.mxu1 %v1346_v7 }
  0x5e   : > { %1053 = vmatpush3.bf16.msra.mxu1 %v1180_v28 }
  0x5f   : > { %1054 = vmatprep.subr.bf16.mxu1 %v1346_v7 }
  0x62   : > { %1055 = vmatpush3.bf16.msra.mxu1 %v1184_v31 }
  0xfd   : > { %v390_v36 = vpop.f32.mrf.mxu1 }
  0xfe   : > { %v391_v41 = vadd.f32 %v390_v36, %v324_v37 }
  0xff   : > { %v392_v38 = vpop.f32.mrf.mxu1 }
 0x100   : > { %v393_v58 = vadd.f32 %v392_v38, %v328_v56 }
 0x101   : > { %v394_v40 = vpop.f32.mrf.mxu1 }
 0x102   : > { %v395_v42 = vadd.f32 %v394_v40, %v324_v37 }
 0x103   : > { %v396_v43 = vpop.f32.mrf.mxu1 }
 0x104   : > { %v440_v44 = vpack.c.bf16 %v395_v42, %v391_v41  ;;  %v397_v57 = vadd.f32 %v396_v43, %v328_v56 }
 0x105   : > { %v433_v46 = vpop.f32.mrf.mxu1 }
 0x106   : > { %v971_v47 = vmul.bf16 3216621497, %v440_v44  ;;  %v434_v49 = vadd.f32 %v433_v46, %v332_v45  ;;  %v441_v61 = vpack.c.bf16 %v397_v57, %v393_v58 }
 0x107   : > { %v1038_v48 = vpop.f32.mrf.mxu1 }
 0x108   : > { %1193 = vpow.bf16 %v971_v47 }
 0x109   : > { %v436_v50 = vpop.f32.mrf.mxu1 }
 0x10a   : > { %v437_v51 = vadd.f32 %v436_v50, %v332_v45 }
 0x10b   : > { %v1039_v52 = vpop.f32.mrf.mxu1 }
 0x10c   : > { %v442_v53 = vpack.c.bf16 %v437_v51, %v434_v49  ;;  %v999_v51 = vld [vmem:[%s1597_s6] ss:$0 sm:$0xff] }
 0x10e   : > { %v972_v55 = vmul.bf16 3216621497, %v442_v53 }
 0x110   : > { %1195 = vpow.bf16 %v972_v55 }
 0x116   : > { %v1194_v59 = vpop.eup %1193 }
 0x117   : > { %v447_v60 = vadd.bf16 1065369472, %v1194_v59 }
 0x119   : > { %1197 = vrcp.bf16 %v447_v60 }
 0x11a   : > { %1199 = vtanh.bf16 %v441_v61 }
 0x11e   : > { %v1196_v62 = vpop.eup %1195 }
 0x11f   : > { %v456_v63 = vadd.bf16 1065369472, %v1196_v62 }
 0x121   : > { %1201 = vrcp.bf16 %v456_v63 }
 0x127   : > { %v1198_v0 = vpop.eup %1197 }
 0x128   : > { %v449_v1 = vmul.bf16 1065369472, %v1198_v0  ;;  %v1200_v2 = vpop.eup %1199 }
 0x12a   : > { %v451_v3 = vmul.bf16 %v1200_v2, %v449_v1 }
 0x12c   : > { %1203 = vtanh.bf16 %v451_v3 }
 0x12f   : > { %v1202_v4 = vpop.eup %1201 }
 0x130   : > { %v458_v5 = vmul.bf16 1065369472, %v1202_v4 }
 0x13a   : > { %v1204_v6 = vpop.eup %1203 }
 0x13b   : > { %v460_v8 = vmul.bf16 %v1204_v6, %v458_v5 }
 0x13d   : > { %671 = vmatmul.mubr.bf16.vlgmr.msra.gmra.mxu0 %v460_v8  ;;  %1057 = vmatmul.mubr.bf16.vlgmr.msra.gmra.mxu1 %v460_v8 }
 0x13e   : > { %1076 = vmatprep.mubr.msk.bf16.mxu0 %vm1347_vm1, %v1346_v7  ;;  %1061 = vmatpush3.bf16.msra.mxu0 %v1185_v9 }
 0x13f   : > { %1062 = vmatprep.subr.bf16.mxu0 %v1346_v7 }
 0x142   : > { %1063 = vmatpush3.bf16.msra.mxu0 %v1186_v10 }
 0x143   : > { %1064 = vmatprep.subr.bf16.mxu0 %v1346_v7 }
 0x146   : > { %1065 = vmatpush3.bf16.msra.mxu0 %v1187_v11 }
 0x147   : > { %1066 = vmatprep.subr.bf16.mxu0 %v1346_v7 }
 0x14a   : > { %1067 = vmatpush3.bf16.msra.mxu0 %v1188_v12 }
 0x14b   : > { %1068 = vmatprep.subr.bf16.mxu0 %v1346_v7 }
 0x14e   : > { %1069 = vmatpush3.bf16.msra.mxu0 %v1189_v13 }
 0x14f   : > { %1070 = vmatprep.subr.bf16.mxu0 %v1346_v7 }
 0x152   : > { %1071 = vmatpush3.bf16.msra.mxu0 %v1190_v14 }
 0x153   : > { %1072 = vmatprep.subr.bf16.mxu0 %v1346_v7 }
 0x156   : > { %1073 = vmatpush3.bf16.msra.mxu0 %v1191_v15 }
 0x157   : > { %1074 = vmatprep.subr.bf16.mxu0 %v1346_v7  ;;  %v506_v7 = vrot.slane %v493_v17, %v331_v39 }
 0x15a   : > { %1075 = vmatpush3.bf16.msra.mxu0 %v1192_v16 }
 0x1fd   : > { %v672_v18 = vpop.f32.mrf.mxu0  ;;  %v715_v19 = vpop.f32.mrf.mxu1 }
 0x1fe   : > { %v673_v25 = vadd.f32 %v672_v18, %v498_v20  ;;  %v716_v31 = vadd.f32 %v715_v19, %v506_v7 }
 0x1ff   : > { %v674_v21 = vpop.f32.mrf.mxu0  ;;  %v1058_v22 = vpop.f32.mrf.mxu1 }
 0x200   : > { %v675_v38 = vadd.f32 %v674_v21, %v502_v34 }
 0x201   : > { %v676_v23 = vpop.f32.mrf.mxu0  ;;  %v718_v24 = vpop.f32.mrf.mxu1 }
 0x202   : > { %v677_v26 = vadd.f32 %v676_v23, %v498_v20  ;;  %v719_v30 = vadd.f32 %v718_v24, %v506_v7 }
 0x203   : > { %v1059_v27 = vpop.f32.mrf.mxu1  ;;  %v678_v36 = vpop.f32.mrf.mxu0 }
 0x204   : > { %v722_v28 = vpack.c.bf16 %v677_v26, %v673_v25  ;;  %v724_v32 = vpack.c.bf16 %v719_v30, %v716_v31  ;;  %v679_v37 = vadd.f32 %v678_v36, %v502_v34 }
 0x206   : > { %v997_v29 = vmul.bf16 3216621497, %v722_v28  ;;  %v998_v35 = vmul.bf16 3216621497, %v724_v32  ;;  %v723_v42 = vpack.c.bf16 %v679_v37, %v675_v38 }
 0x208   : > { %1205 = vpow.bf16 %v997_v29 }
 0x209   : > { %1207 = vpow.bf16 %v998_v35 }
 0x216   : > { %v1206_v40 = vpop.eup %1205 }
 0x217   : > { %v729_v41 = vadd.bf16 1065369472, %v1206_v40  ;;  %v1208_v39 = vpop.eup %1207 }
 0x218   : > { %v738_v43 = vadd.bf16 1065369472, %v1208_v39 }
 0x219   : > { %1209 = vrcp.bf16 %v729_v41 }
 0x21a   : > { %1211 = vtanh.bf16 %v723_v42 }
 0x21b   : > { %1213 = vrcp.bf16 %v738_v43 }
 0x227   : > { %v1210_v44 = vpop.eup %1209 }
 0x228   : > { %v731_v45 = vmul.bf16 1065369472, %v1210_v44  ;;  %v1212_v46 = vpop.eup %1211 }
 0x229   : > { %v1214_v33 = vpop.eup %1213 }
 0x22a   : > { %v733_v47 = vmul.bf16 %v1212_v46, %v731_v45  ;;  %v740_v48 = vmul.bf16 1065369472, %v1214_v33 }
 0x22c   : > { %1215 = vtanh.bf16 %v733_v47 }
 0x23a   : > { %v1216_v49 = vpop.eup %1215 }
 0x23b   : > { %v742_v50 = vmul.bf16 %v1216_v49, %v740_v48 }
 0x23d   : > { %1077 = vmatmul.mubr.bf16.vlgmr.msra.gmra.mxu0 %v742_v50 }
 0x2fd   : > { %v848_v52 = vpop.f32.mrf.mxu0 }
 0x2fe   : > { %v849_v53 = vadd.f32 %v999_v51, %v848_v52 }
 0x2ff   : > { %v1078_v54 = vpop.f32.mrf.mxu0 }
 0x300   : > { %855 = vst [vmem:[%s302_s20] sm:$0xff] %v849_v53 }
 0x301   : > { %v851_v55 = vpop.f32.mrf.mxu0 }
 0x302   : > { %v852_v56 = vadd.f32 %v999_v51, %v851_v55 }
 0x303   : > { %v1079_v57 = vpop.f32.mrf.mxu0 }
 0x304   : > { %856 = vst [vmem:[%s302_s20 + $0x8] sm:$0xff] %v852_v56 }
 0x305   : > { %1282 = shalt.err (!%p1279_p3)
}
 0x306   : > { %s1283_s13 = scalar_lea.hbm %s1549_s8, 256  ;;  %s1287_s19 = scalar_lea.hbm %s1598_s7, 512 }
 0x307   : > { %p1284_p2 = scmp.ne.s32.totalorder %s1549_s8, %s1283_s13  ;;  %p1288_p6 = scmp.lt.s32.totalorder %s1549_s8, %s1598_s7 }
 0x308   : > { %p1289_p9 = scmp.lt.s32.totalorder %s1287_s19, %s1283_s13 }
 0x309   : > { %p1285_p4 = pnand %p1284_p2, %p1429_p5 }
 0x30a   : > { %p1290_p12 = por %p1289_p9, %p1288_p6 }
 0x30b   : > { %p1286_p13 = pneg %p1285_p4 }
 0x30d   : > { %p1291_p10 = pnand %p1290_p12, %p1286_p13 }
 0x30f   : > { %1294 = shalt.err (!%p1291_p10)
}
 0x310   : > { %s1349_s23 = smov 128   ;;  %s1350_s29 = smov 8  }
 0x311   : > { %1088 = dma.vmem_to_hbm [thread:$0]  (%p1429_p5), %s1544_s21, 256, %s1549_s8, %s1551_s9, %s1349_s23, %s1349_s23, %s1350_s29  }
 0x312 PF: > { %p1105_p7 = scmp.ge.s32.totalorder %s1337_s27, 2  ;;  %s886_s14 = sand.u32 1, %s1325_s24  }
 0x313   : > { %p1608_p8 = scmp.ne.s32.totalorder %s1601_s12, 0  ;;  %s887_s28 = scalar_lea.sflag [#allocation4], %s886_s14 }
 0x315   : > { %p1098_p11 = pnand %p1105_p7, %p1608_p8 }
 0x317   : > { %p1099_p0 = pneg %p1098_p11 }
 0x319   : > { %1320 = dma.done.wait (%p1099_p0), %s887_s28, 256  }
 0x31a   : > { %1322 = vsyncadd (%p1099_p0), %s887_s28, 4294967040  ;;  %p19_p1 = scmp.ge.s32.totalorder %s1416_s30, 4   ;;  %s1609_s24 = smov %s1329_s25 }
 0x31b   : > { %s1610_s25 = smov %s1333_s26  ;;  %s1611_s26 = smov %s1427_s10 }
 0x31c   : > { %s1612_s27 = smov %s1416_s30  ;;  %21 = sbr.rel (!%p19_p1) target bundleno = 5 (0x5), region = 92 }
 0x321   :  { %892 = vsyncpa [#allocation3], 1 }
 0x322   :  { %894 = vsyncpa [#allocation3 + $0x1], 1 }
 0x323   :  { %895 = vsyncpa [#allocation6], 1 }
 0x324   :  { %896 = vsyncpa [#allocation4], 1 }
 0x325   :  { %898 = vsyncpa [#allocation4 + $0x1], 1 }

</bundles_post_ra>
